<compile_context>
chip_gen: v6e
topology: v6e:2x2x1
jax: 0.10.0
libtpu: 0.0.40
codegen_flags: <defaults>
</compile_context>

<pallas_src>
import functools

import jax
import jax.numpy as jnp
from jax.experimental import pallas as pl
from jax.experimental.pallas import tpu as pltpu


# --------------------------------------------------------------------------
# Kernels
# --------------------------------------------------------------------------
def _encoder_kernel(x_ref, w1_ref, b1_ref, w2_ref, b2_ref, e_ref):
    """Encoder for one batch tile.

    x_ref : (tb_e, Up) bf16   padded input rows (pre-cast in wrapper)
    w1_ref: (Up, Hp)   bf16   encoder-1 weight (transposed, hidden padded)
    b1_ref: (1, Hp)    f32
    w2_ref: (Hp, Up)   bf16   encoder-2 weight (transposed)
    b2_ref: (1, Up)    f32
    e_ref : (tb_e, Up) bf16   encoder output slab
    """
    # h = sigmoid(x @ w1 + b1); Dropout(0.2) == identity (eval semantics).
    h = jnp.dot(x_ref[...], w1_ref[...], preferred_element_type=jnp.float32)
    h = jax.nn.sigmoid(h + b1_ref[...]).astype(jnp.bfloat16)
    # e = sigmoid(h @ w2 + b2); Dropout == identity.
    e = jnp.dot(h, w2_ref[...], preferred_element_type=jnp.float32)
    e_ref[...] = jax.nn.sigmoid(e + b2_ref[...]).astype(e_ref.dtype)


def _decoder_kernel(e_ref, w3_ref, b3_ref, *rest, is_train):
    """One (batch-tile i, out-col-tile j, k-block) decoder grid step.

    e_ref : (tb, tk) bf16   encoder output block        index (i, k)
    w3_ref: (tk, tn) bf16   decoder weight block        index (k, j)
    b3_ref: (1, tn)  f32    decoder bias block          index (0, j)
    x_ref : (tb, tn) bf16   input block for sign mask   index (i, j) [train only]
    o_ref : (tb, tn) f32    output block (f32 — doubles as the accumulator)
    """
    if is_train:
        x_ref, o_ref = rest
    else:
        (o_ref,) = rest

    k = pl.program_id(2)

    @pl.when(k == 0)
    def _():
        o_ref[...] = jnp.zeros_like(o_ref)

    # Hot loop: a single MXU matmul accumulating into the resident f32 block.
    o_ref[...] += jnp.dot(e_ref[...], w3_ref[...],
                          preferred_element_type=jnp.float32)

    @pl.when(k == pl.num_programs(2) - 1)
    def _():
        d = o_ref[...] + b3_ref[...]
        if is_train:
            # sign() on bf16 is exact (zeros preserved, same exponent range).
            d = d * jnp.sign(x_ref[...]).astype(jnp.float32)
        o_ref[...] = d


# --------------------------------------------------------------------------
# Wrapper
# --------------------------------------------------------------------------
def _round_up(x, m):
    return ((x + m - 1) // m) * m


def _pick_tile(dim, prefs):
    for t in prefs:
        if t <= dim and dim % t == 0:
            return t
    return dim


def autorec_forward(x, params, is_train=1, *, tb=None, tn=None, tk=None):
    """x: (B, n_users) float32. params: dict of torch-shaped weights.

    `is_train` must be a static Python value (branch resolved at trace time).
    """
    if isinstance(is_train, jax.core.Tracer):
        raise ValueError("is_train must be a static Python value, not a tracer")
    train = bool(is_train == 1)

    B, U = x.shape
    H = params["w1"].shape[0]                      # 50
    Hp = max(64, _round_up(H, 64))                 # hidden padded to 64

    # Pad batch / feature dims to tile-friendly sizes.
    Bp = _round_up(max(B, 8), 8)
    Up = _round_up(max(U, 256), 256)

    f32, bf16 = jnp.float32, jnp.bfloat16

    # ---- parameter / input packing (bf16 weights + x, f32 biases) ----------
    x_b = jnp.zeros((Bp, Up), bf16).at[:B, :U].set(x.astype(bf16))
    w1 = jnp.zeros((Up, Hp), bf16).at[:U, :H].set(params["w1"].T.astype(bf16))
    b1 = jnp.zeros((1, Hp), f32).at[:, :H].set(params["b1"].astype(f32))
    w2 = jnp.zeros((Hp, Up), bf16).at[:H, :U].set(params["w2"].T.astype(bf16))
    b2 = jnp.zeros((1, Up), f32).at[:, :U].set(params["b2"].astype(f32))
    w3 = jnp.zeros((Up, Up), bf16).at[:U, :U].set(params["w3"].T.astype(bf16))
    b3 = jnp.zeros((1, Up), f32).at[:, :U].set(params["b3"].astype(f32))

    # ---- generation-aware VMEM budget ---------------------------------------
    try:
        phys_vmem = int(getattr(pltpu.get_tpu_info(), "vmem_capacity_bytes", 0))
    except Exception:  # pragma: no cover - conservative fallback
        phys_vmem = 0
    if phys_vmem <= 0:
        phys_vmem = 64 << 20                        # assume v7x (smallest VMEM)
    vmem_cap = max(32 << 20, min(int(phys_vmem * 0.75), 100 << 20))
    # -> ~48 MiB on v7x (64 MiB physical), ~96 MiB on v5e/v6e (128 MiB physical)

    # =========================================================================
    # Stage 1: encoder  e = sigmoid(sigmoid(x@w1+b1)@w2+b2)   (bf16, (Bp, Up))
    # =========================================================================
    def _enc_footprint(t):
        return 2 * (t * Up * 2          # x block
                    + t * Up * 2        # e output block
                    + Up * Hp * 2       # w1
                    + Hp * Up * 2       # w2
                    + (Hp + Up) * 4)    # biases

    tb_e = 8
    for cand in (512, 256, 128, 64, 32, 16, 8):
        if Bp % cand == 0 and _enc_footprint(cand) <= vmem_cap // 2:
            tb_e = cand
            break
    while Bp // tb_e < 2 and tb_e > 8:              # v7x: give both TCs work
        tb_e //= 2

    e = pl.pallas_call(
        _encoder_kernel,
        out_shape=jax.ShapeDtypeStruct((Bp, Up), bf16),
        grid_spec=pltpu.PrefetchScalarGridSpec(
            num_scalar_prefetch=0,
            grid=(Bp // tb_e,),
            in_specs=[
                pl.BlockSpec((tb_e, Up), lambda i: (i, 0)),   # x (bf16)
                pl.BlockSpec((Up, Hp), lambda i: (0, 0)),     # w1^T
                pl.BlockSpec((1, Hp), lambda i: (0, 0)),      # b1
                pl.BlockSpec((Hp, Up), lambda i: (0, 0)),     # w2^T
                pl.BlockSpec((1, Up), lambda i: (0, 0)),      # b2
            ],
            out_specs=pl.BlockSpec((tb_e, Up), lambda i: (i, 0)),
        ),
        compiler_params=pltpu.CompilerParams(
            dimension_semantics=("parallel",),
            vmem_limit_bytes=min(int(_enc_footprint(tb_e) * 1.5) + (4 << 20),
                                 vmem_cap),
        ),
    )(x_b, w1, b1, w2, b2)

    # =========================================================================
    # Stage 2: decoder  out = e @ w3 + b3  (optionally * sign(x))
    # =========================================================================
    if tb is None:
        tb = _pick_tile(Bp, (1024, 512, 256, 128, 64, 32, 16, 8))
    if tn is None:
        tn = _pick_tile(Up, (512, 256, 128))
    if tk is None:
        tk = _pick_tile(Up, (512, 256, 128))
    assert Bp % tb == 0 and Up % tn == 0 and Up % tk == 0

    # Guarantee >= 2 parallel tiles so both v7x TensorCores are used.
    while (Bp // tb) * (Up // tn) < 2:
        if tn > 128 and Up % (tn // 2) == 0:
            tn //= 2
        elif tb > 8 and Bp % (tb // 2) == 0:
            tb //= 2
        else:
            break

    grid = (Bp // tb, Up // tn, Up // tk)

    dec_in_specs = [
        pl.BlockSpec((tb, tk), lambda i, j, k: (i, k)),    # e block
        pl.BlockSpec((tk, tn), lambda i, j, k: (k, j)),    # w3^T block
        pl.BlockSpec((1, tn), lambda i, j, k: (0, j)),     # b3 block
    ]
    dec_inputs = [e, w3, b3]
    if train:
        dec_in_specs.append(pl.BlockSpec((tb, tn), lambda i, j, k: (i, j)))  # x
        dec_inputs.append(x_b)

    dec_footprint = 2 * (tb * tk * 2       # e block
                         + tk * tn * 2     # w3 block
                         + tn * 4          # b3 block
                         + (tb * tn * 2 if train else 0)   # x block
                         + tb * tn * 4)    # f32 output block
    dec_vmem_limit = min(int(dec_footprint * 1.5) + (4 << 20), vmem_cap)

    out = pl.pallas_call(
        functools.partial(_decoder_kernel, is_train=train),
        out_shape=jax.ShapeDtypeStruct((Bp, Up), f32),
        grid_spec=pltpu.PrefetchScalarGridSpec(
            num_scalar_prefetch=0,
            grid=grid,
            in_specs=dec_in_specs,
            out_specs=pl.BlockSpec((tb, tn), lambda i, j, k: (i, j)),
        ),
        compiler_params=pltpu.CompilerParams(
            dimension_semantics=("parallel", "parallel", "arbitrary"),
            vmem_limit_bytes=dec_vmem_limit,
        ),
    )(*dec_inputs)

    return out[:B, :U]


# --------------------------------------------------------------------------
# Pure-JAX reference (same bf16 quantization / f32 accumulation as the kernel)
# --------------------------------------------------------------------------
def autorec_reference(x, params, is_train=1):
    f32 = jnp.float32
    q = lambda a: a.astype(jnp.bfloat16).astype(f32)
    h = jax.nn.sigmoid(q(x) @ q(params["w1"]).T + params["b1"])
    h = q(h)
    e = jax.nn.sigmoid(h @ q(params["w2"]).T + params["b2"])
    e = q(e)
    d = e @ q(params["w3"]).T + params["b3"]
    if is_train == 1:
        d = d * jnp.sign(x)
    return d


def init_params(key, n_users, hidden=50, dtype=jnp.float32):
    """Deterministic init with PyTorch Linear shapes: W is (out, in)."""
    ks = jax.random.split(key, 6)

    def linear(kw, kb, out_f, in_f):
        bound = 1.0 / jnp.sqrt(in_f)
        w = jax.random.uniform(kw, (out_f, in_f), dtype, -bound, bound)
        b = jax.random.uniform(kb, (out_f,), dtype, -bound, bound)
        return w, b

    w1, b1 = linear(ks[0], ks[1], hidden, n_users)     # Linear(n_users, 50)
    w2, b2 = linear(ks[2], ks[3], n_users, hidden)     # Linear(50, n_users)
    w3, b3 = linear(ks[4], ks[5], n_users, n_users)    # decoder Linear
    return {"w1": w1, "b1": b1, "w2": w2, "b2": b2, "w3": w3, "b3": b3}


if __name__ == "__main__":
    key = jax.random.PRNGKey(0)
    k_x, k_p = jax.random.split(key)

    n_users = 512     # lane/MXU-aligned feature dim
    batch = 128

    # Sparse-ish ratings (zeros matter because of the sign(x) masking).
    x = jax.random.uniform(k_x, (batch, n_users), jnp.float32, 0.0, 5.0)
    mask = jax.random.bernoulli(jax.random.fold_in(k_x, 1), 0.3, (batch, n_users))
    x = x * mask.astype(jnp.float32)

    params = init_params(k_p, n_users)

    out = jax.block_until_ready(autorec_forward(x, params, is_train=1))
    ref = autorec_reference(x, params, is_train=1)

    assert out.shape == (batch, n_users)
    max_err = jnp.max(jnp.abs(out - ref))
    assert jnp.allclose(out, ref, atol=1e-2, rtol=1e-2), f"mismatch: {max_err}"

    print("KERNEL_OK")
</pallas_src>

<mosaic_0001>
module attributes {stable_mosaic.version = 11 : i64} {
  func.func @_encoder_kernel(%arg0: i32, %arg1: memref<64x512xbf16, #tpu.memory_space<vmem>>, %arg2: memref<512x64xbf16, #tpu.memory_space<vmem>>, %arg3: memref<1x64xf32, #tpu.memory_space<vmem>>, %arg4: memref<64x512xbf16, #tpu.memory_space<vmem>>, %arg5: memref<1x512xf32, #tpu.memory_space<vmem>>, %arg6: memref<64x512xbf16, #tpu.memory_space<vmem>>) attributes {dimension_semantics = [#tpu.dimension_semantics<parallel>], iteration_bounds = array<i64: 2>, scalar_prefetch = 0 : i64, scratch_operands = 0 : i64, tpu.core_type = #tpu.core_type<tc>, window_params = [{transform_indices = @transform_0, window_bounds = array<i64: 64, 512>}, {pipeline_mode = #tpu.pipeline_mode<synchronous>, transform_indices = @transform_1, window_bounds = array<i64: 512, 64>}, {pipeline_mode = #tpu.pipeline_mode<synchronous>, transform_indices = @transform_2, window_bounds = array<i64: 1, 64>}, {pipeline_mode = #tpu.pipeline_mode<synchronous>, transform_indices = @transform_3, window_bounds = array<i64: 64, 512>}, {pipeline_mode = #tpu.pipeline_mode<synchronous>, transform_indices = @transform_4, window_bounds = array<i64: 1, 512>}, {transform_indices = @transform_5, window_bounds = array<i64: 64, 512>}]} {
    %c0 = arith.constant 0 : index
    %c0_0 = arith.constant 0 : index
    %0 = vector.load %arg1[%c0, %c0_0] : memref<64x512xbf16, #tpu.memory_space<vmem>>, vector<64x512xbf16>
    %c0_1 = arith.constant 0 : index
    %c0_2 = arith.constant 0 : index
    %1 = vector.load %arg2[%c0_1, %c0_2] : memref<512x64xbf16, #tpu.memory_space<vmem>>, vector<512x64xbf16>
    %cst = arith.constant dense<0.000000e+00> : vector<64x64xf32>
    %2 = tpu.matmul %0, %1, %cst {dimension_numbers = #tpu.dot_dimension_numbers<[1], [0], [0], [1], [0, 0, 1, 1], [], []>} : vector<64x512xbf16>, vector<512x64xbf16>, vector<64x64xf32> -> vector<64x64xf32>
    %c0_3 = arith.constant 0 : index
    %c0_4 = arith.constant 0 : index
    %3 = vector.load %arg3[%c0_3, %c0_4] : memref<1x64xf32, #tpu.memory_space<vmem>>, vector<1x64xf32>
    %4 = vector.broadcast %3 : vector<1x64xf32> to vector<64x64xf32>
    %5 = arith.addf %2, %4 : vector<64x64xf32>
    %6 = arith.negf %5 : vector<64x64xf32>
    %7 = math.exp %6 : vector<64x64xf32>
    %cst_5 = arith.constant 1.000000e+00 : f32
    %8 = vector.broadcast %cst_5 : f32 to vector<64x64xf32>
    %9 = arith.addf %8, %7 : vector<64x64xf32>
    %10 = arith.divf %8, %9 : vector<64x64xf32>
    %11 = arith.truncf %10 : vector<64x64xf32> to vector<64x64xbf16>
    %c0_6 = arith.constant 0 : index
    %c0_7 = arith.constant 0 : index
    %12 = vector.load %arg4[%c0_6, %c0_7] : memref<64x512xbf16, #tpu.memory_space<vmem>>, vector<64x512xbf16>
    %cst_8 = arith.constant dense<0.000000e+00> : vector<64x512xf32>
    %13 = tpu.matmul %11, %12, %cst_8 {dimension_numbers = #tpu.dot_dimension_numbers<[1], [0], [0], [1], [0, 0, 1, 1], [], []>} : vector<64x64xbf16>, vector<64x512xbf16>, vector<64x512xf32> -> vector<64x512xf32>
    %c0_9 = arith.constant 0 : index
    %c0_10 = arith.constant 0 : index
    %14 = vector.load %arg5[%c0_9, %c0_10] : memref<1x512xf32, #tpu.memory_space<vmem>>, vector<1x512xf32>
    %15 = vector.broadcast %14 : vector<1x512xf32> to vector<64x512xf32>
    %16 = arith.addf %13, %15 : vector<64x512xf32>
    %17 = arith.negf %16 : vector<64x512xf32>
    %18 = math.exp %17 : vector<64x512xf32>
    %cst_11 = arith.constant 1.000000e+00 : f32
    %19 = vector.broadcast %cst_11 : f32 to vector<64x512xf32>
    %20 = arith.addf %19, %18 : vector<64x512xf32>
    %21 = arith.divf %19, %20 : vector<64x512xf32>
    %22 = arith.truncf %21 : vector<64x512xf32> to vector<64x512xbf16>
    %c0_12 = arith.constant 0 : index
    %c0_13 = arith.constant 0 : index
    %23 = vector.load %arg6[%c0_12, %c0_13] : memref<64x512xbf16, #tpu.memory_space<vmem>>, vector<64x512xbf16>
    tpu.vector_store %arg6[%c0_12, %c0_13], %22 {strides = array<i32>} : memref<64x512xbf16, #tpu.memory_space<vmem>>, vector<64x512xbf16>,
    return
  }
  func.func @transform_0(%arg0: i32) -> (i32, i32) {
    %c0_i32 = arith.constant 0 : i32
    %c0_i32_0 = arith.constant 0 : i32
    return %arg0, %c0_i32 : i32, i32
  }
  func.func @transform_1(%arg0: i32) -> (i32, i32) {
    %c0_i32 = arith.constant 0 : i32
    %c0_i32_0 = arith.constant 0 : i32
    %c0_i32_1 = arith.constant 0 : i32
    return %c0_i32, %c0_i32_0 : i32, i32
  }
  func.func @transform_2(%arg0: i32) -> (i32, i32) {
    %c0_i32 = arith.constant 0 : i32
    %c0_i32_0 = arith.constant 0 : i32
    %c0_i32_1 = arith.constant 0 : i32
    return %c0_i32, %c0_i32_0 : i32, i32
  }
  func.func @transform_3(%arg0: i32) -> (i32, i32) {
    %c0_i32 = arith.constant 0 : i32
    %c0_i32_0 = arith.constant 0 : i32
    %c0_i32_1 = arith.constant 0 : i32
    return %c0_i32, %c0_i32_0 : i32, i32
  }
  func.func @transform_4(%arg0: i32) -> (i32, i32) {
    %c0_i32 = arith.constant 0 : i32
    %c0_i32_0 = arith.constant 0 : i32
    %c0_i32_1 = arith.constant 0 : i32
    return %c0_i32, %c0_i32_0 : i32, i32
  }
  func.func @transform_5(%arg0: i32) -> (i32, i32) {
    %c0_i32 = arith.constant 0 : i32
    %c0_i32_0 = arith.constant 0 : i32
    return %arg0, %c0_i32 : i32, i32
  }
}

</mosaic_0001>

<bundles_post_ra>
// kernel: tpu_custom_call.1
= control target key start
LH: loop header
LB: loop body
LE: loop exit
PB: predicated region body
PF: predicated region fallthrough
CT: control target
= control target key end

     0   :  { %10 = vsyncpa [#allocation3], 0  ;;  %s2494_s0 = inlined_call_operand.vmem [shape: bf16[128,512], index: 0, kind: input, shape index: {}]   ;;  %s2495_s1 = inlined_call_operand.vmem [shape: bf16[512,64], index: 1, kind: input, shape index: {}]   ;;  %s2496_s2 = inlined_call_operand.hbm [shape: f32[1,64], index: 2, kind: input, shape index: {}]   ;;  %s2497_s3 = inlined_call_operand.vmem [shape: bf16[64,512], index: 3, kind: input, shape index: {}]   ;;  %s2498_s4 = inlined_call_operand.vmem [shape: f32[1,512], index: 4, kind: input, shape index: {}]   ;;  %s2499_s5 = inlined_call_operand.hbm [shape: bf16[128,512], index: 5, kind: output, shape index: {}]  }
   0x1   :  { %11 = vsyncpa [#allocation4], 0 }
   0x2   :  { %13 = vsyncpa [#allocation4 + $0x1], 0  ;;  %s2118_s18 = smov 0   ;;  %s2120_s19 = smov 0  }
   0x3   :  { %s2122_s20 = smov 0   ;;  %s2124_s21 = smov 0  }
   0x4 LB: > { %s2139_s22 = sadd.s32 4294967295, %s2081_s21   ;;  %s1454_s23 = sadd.s32 4294967294, %s2081_s21   ;;  %s2081_s21 = sphi %s2124_s21, %s2506_s21   ;;  %s2077_s20 = sphi %s2122_s20, %s2505_s20   ;;  %s2073_s19 = sphi %s2120_s19, %s2504_s19   ;;  %s2069_s18 = sphi %s2118_s18, %s2503_s18  }
   0x5   : > { %s2143_s24 = sadd.s32 1, %s2081_s21   ;;  %s136_s25 = sadd.s32 1, %s2077_s20 }
   0x6   : > { %s133_s26 = ssub.s32 %s2081_s21, %s2143_s24  ;;  %p146_p0 = scmp.ne.s32.totalorder %s2077_s20, %s2073_s19 }
   0x7   : > { %p134_p1 = scmp.eq.s32.totalorder %s133_s26, 0  ;;  %p147_p2 = scmp.eq.s32.totalorder %s2139_s22, 1 }
   0x8   : > { %p152_p3 = scmp.ne.s32.totalorder %s2073_s19, %s2069_s18  ;;  %p153_p4 = scmp.eq.s32.totalorder %s1454_s23, 1 }
   0x9   : > { %s2154_s27 = scalar_select %p134_p1, %s2077_s20, %s136_s25  }
   0xa   : > { %p2156_p5 = por %p147_p2, %p146_p0  ;;  %p2160_p6 = por %p153_p4, %p152_p3 }
   0xb   : > { %p1455_p7 = scmp.ge.s32.totalorder %s2081_s21, 1  ;;  %p160_p8 = scmp.lt.s32.totalorder %s2081_s21, 3 }
   0xc   : > { %p1712_p9 = scmp.eq.s32.totalorder %s2139_s22, 0  ;;  %s2083_s6 = smov [#allocation2]  }
   0xd   : > { %p2167_p10 = pnand %p1455_p7, %p160_p8  ;;  %s176_s7 = sshll.u32 %s2083_s6, 4  ;;  %s177_s7 = int_to_ptr.vmem [resolvable:$true] %s176_s7 }
   0xe   : > { %s2002_s8 = scalar_lea.vmem %s177_s7, 16  ;;  %s2009_s9 = scalar_lea.vmem %s177_s7, 32 }
   0xf   : > { %p1704_p11 = pneg %p2167_p10  ;;  %p2003_p0 = scmp.ne.s32.totalorder %s177_s7, %s2002_s8 }
  0x10   : > { %p2010_p3 = scmp.lt.s32.totalorder %s177_s7, %s177_s7  ;;  %p2011_p4 = scmp.lt.s32.totalorder %s2009_s9, %s2002_s8 }
  0x11   : > { %p1705_p12 = pnand %p1712_p9, %p1704_p11 }
  0x12   : > { %p2012_p7 = por %p2011_p4, %p2010_p3 }
  0x13   : > { %p1993_p13 = pneg %p1705_p12 }
  0x15   : > { %p2005_p1 = pnand %p2003_p0, %p1993_p13 }
  0x17   : > { %p2006_p2 = pneg %p2005_p1 }
  0x19   : > { %p2013_p8 = pnand %p2012_p7, %p2006_p2 }
  0x1b   : > { %2016 = shalt.err (!%p2013_p8)
}
  0x1c   : > { %1707 = dma.hbm_to_vmem [thread:$0]  (!%p1705_p12), %s2496_s2, 16, %s177_s7, [#allocation3]  }
  0x1d   : > { %205 = sbr.rel (%p2167_p10) target bundleno = 598 (0x256), region = 40 }
  0x22   : > { %2060 = dma.done.wait (%p1712_p9), [#allocation3], 16  }
  0x23   : > { %2062 = vsyncadd (%p1712_p9), [#allocation3], 4294967280  ;;  %v1751_v0 = vld [vmem:[%s2495_s1 + $0x78] sm:$0xff]   ;;  %v1755_v4 = vld [vmem:[%s2495_s1 + $0x70] sm:$0xff]   ;;  %s1461_s12 = sshll.u32 %s2139_s22, 3  ;;  %vm902_vm0 = vcmask 523264  }
  0x24   : > { %v1752_v1 = vld [vmem:[%s2495_s1 + $0xf8] sm:$0xff]   ;;  %1618 = vmatprep.subr.bf16.mxu0 %v1751_v0  ;;  %v1756_v5 = vld [vmem:[%s2495_s1 + $0xf0] sm:$0xff]   ;;  %v1759_v8 = vld [vmem:[%s2495_s1 + $0x68] sm:$0xff]   ;;  %p235_p9 = scmp.lt.s32.totalorder %s1461_s12, 15  ;;  %v2084_v0 = vmov 0   ;;  %s1617_s7 = sshll.u32 %s2139_s22, 11 }
  0x25   : > { %v1753_v2 = vld [vmem:[%s2495_s1 + $0x38] sm:$0xff]   ;;  %1658 = vmatprep.subr.bf16.mxu1 %v1752_v1  ;;  %v1757_v6 = vld [vmem:[%s2495_s1 + $0x30] sm:$0xff]   ;;  %v1760_v9 = vld [vmem:[%s2495_s1 + $0xe8] sm:$0xff]   ;;  %s2446_s11 = scalar_lea.hbm %s2499_s5, %s1617_s7 }
  0x26   : > { %v1754_v3 = vld [vmem:[%s2495_s1 + $0xb8] sm:$0xff]   ;;  %1619 = vmatpush3.bf16.msra.mxu0 %v1753_v2  ;;  %v1758_v7 = vld [vmem:[%s2495_s1 + $0xb0] sm:$0xff]   ;;  %v1761_v10 = vld [vmem:[%s2495_s1 + $0x28] sm:$0xff]   ;;  %s2508_s12 = smov (!%p235_p9, %s1461_s12), 15 }
  0x27   : > { %1659 = vmatpush3.bf16.msra.mxu1 %v1754_v3  ;;  %1620 = vmatprep.subr.bf16.mxu0 %v1755_v4  ;;  %v1762_v11 = vld [vmem:[%s2495_s1 + $0xa8] sm:$0xff]   ;;  %v1763_v12 = vld [vmem:[%s2495_s1 + $0x60] sm:$0xff]   ;;  %v1767_v16 = vld [vmem:[%s2495_s1 + $0x58] sm:$0xff]   ;;  %s1599_s26 = sshll.u32 %s2508_s12, 4 }
  0x28   : > { %1660 = vmatprep.subr.bf16.mxu1 %v1756_v5  ;;  %v1764_v13 = vld [vmem:[%s2495_s1 + $0xe0] sm:$0xff]   ;;  %v1768_v17 = vld [vmem:[%s2495_s1 + $0xd8] sm:$0xff]   ;;  %v1771_v20 = vld [vmem:[%s2495_s1 + $0x50] sm:$0xff]   ;;  %s2278_s14 = scalar_lea.vmem %s2494_s0, %s1599_s26  ;;  %s231_s26 = sand.u32 1, %s2073_s19  }
  0x29   : > { %v1765_v14 = vld [vmem:[%s2495_s1 + $0x20] sm:$0xff]   ;;  %v1769_v18 = vld [vmem:[%s2495_s1 + $0x18] sm:$0xff]   ;;  %v1772_v21 = vld [vmem:[%s2495_s1 + $0xd0] sm:$0xff]   ;;  %s2410_s30 = sshll.u32 %s231_s26, 7  ;;  %s2454_s22 = scalar_lea.sflag [#allocation4], %s231_s26 }
  0x2a   : > { %1621 = vmatpush3.bf16.msra.mxu0 %v1757_v6  ;;  %v1766_v15 = vld [vmem:[%s2495_s1 + $0xa0] sm:$0xff]   ;;  %v1770_v19 = vld [vmem:[%s2495_s1 + $0x98] sm:$0xff]   ;;  %v1773_v22 = vld [vmem:[%s2495_s1 + $0x10] sm:$0xff]   ;;  %s2419_s6 = scalar_lea.vmem [#allocation5], %s2410_s30 }
  0x2b   : > { %1661 = vmatpush3.bf16.msra.mxu1 %v1758_v7  ;;  %1622 = vmatprep.subr.bf16.mxu0 %v1759_v8  ;;  %v1774_v23 = vld [vmem:[%s2495_s1 + $0x90] sm:$0xff]   ;;  %v1775_v24 = vld [vmem:[%s2495_s1 + $0x48] sm:$0xff]   ;;  %v1779_v28 = vld [vmem:[%s2495_s1 + $0x40] sm:$0xff]   ;;  %s1380_s8 = sshll.u32 %s2419_s6, 4  ;;  %s2448_s8 = int_to_ptr.vmem [resolvable:$true] %s1380_s8 }
  0x2c   : > { %1662 = vmatprep.subr.bf16.mxu1 %v1760_v9  ;;  %v1776_v25 = vld [vmem:[%s2495_s1 + $0xc8] sm:$0xff]   ;;  %v1780_v29 = vld [vmem:[%s2495_s1 + $0xc0] sm:$0xff]   ;;  %s2017_s13 = scalar_lea.vmem %s2448_s8, 2048 }
  0x2d   : > { %v1777_v26 = vld [vmem:[%s2495_s1 + $0x8] sm:$0xff]   ;;  %v1781_v30 = vld [vmem:[%s2495_s1] sm:$0xff]   ;;  %p2018_p10 = scmp.ne.s32.totalorder %s2448_s8, %s2017_s13 }
  0x2e   : > { %1623 = vmatpush3.bf16.msra.mxu0 %v1761_v10  ;;  %v1778_v27 = vld [vmem:[%s2495_s1 + $0x88] sm:$0xff]   ;;  %v1782_v31 = vld [vmem:[%s2495_s1 + $0x80] sm:$0xff]  }
  0x2f   : > { %1663 = vmatpush3.bf16.msra.mxu1 %v1762_v11  ;;  %1624 = vmatprep.subr.bf16.mxu0 %v1763_v12  ;;  %v1783_v32 = vld [vmem:[%s2278_s14] ss:$16 sps:$4 sm:$0xff]   ;;  %v1785_v33 = vld [vmem:[%s2278_s14 + $0x4] ss:$16 sps:$4 sm:$0xff]   ;;  %v1786_v34 = vld [vmem:[%s2278_s14 + $0x8] ss:$16 sps:$4 sm:$0xff]   ;;  %p2019_p11 = pnand %p2018_p10, %p2156_p5 }
  0x30   : > { %1664 = vmatprep.subr.bf16.mxu1 %v1764_v13  ;;  %v1788_v35 = vld [vmem:[%s2278_s14 + $0xc] ss:$16 sps:$4 sm:$0xff]   ;;  %634 = vmatprep.mubr.bf16.mxu0 %v1785_v33  ;;  %v1789_v36 = vld [vmem:[%s2278_s14 + $0x24] ss:$16 sps:$4 sm:$0xff]   ;;  %v1793_v38 = vld [vmem:[%s2278_s14 + $0x20] ss:$16 sps:$4 sm:$0xff]  }
  0x31   : > { %699 = vmatprep.mubr.bf16.mxu1 %v1788_v35  ;;  %v1791_v37 = vld [vmem:[%s2278_s14 + $0x2c] ss:$16 sps:$4 sm:$0xff]   ;;  %v1794_v39 = vld [vmem:[%s2278_s14 + $0x28] ss:$16 sps:$4 sm:$0xff]   ;;  %v1795_v40 = vld [vmem:[%s2278_s14 + $0x44] ss:$16 sps:$4 sm:$0xff]   ;;  %p2020_p12 = pneg %p2019_p11 }
  0x32   : > { %1625 = vmatpush3.bf16.msra.mxu0 %v1765_v14  ;;  %v1797_v41 = vld [vmem:[%s2278_s14 + $0x4c] ss:$16 sps:$4 sm:$0xff]   ;;  %v1799_v42 = vld [vmem:[%s2278_s14 + $0x40] ss:$16 sps:$4 sm:$0xff]   ;;  %v1800_v43 = vld [vmem:[%s2278_s14 + $0x48] ss:$16 sps:$4 sm:$0xff]  }
  0x33   : > { %1665 = vmatpush3.bf16.msra.mxu1 %v1766_v15  ;;  %1626 = vmatprep.subr.bf16.mxu0 %v1767_v16  ;;  %v1801_v44 = vld [vmem:[%s2278_s14 + $0x64] ss:$16 sps:$4 sm:$0xff]   ;;  %v1803_v45 = vld [vmem:[%s2278_s14 + $0x6c] ss:$16 sps:$4 sm:$0xff]   ;;  %v1805_v46 = vld [vmem:[%s2278_s14 + $0x60] ss:$16 sps:$4 sm:$0xff]  }
  0x34   : > { %1666 = vmatprep.subr.bf16.mxu1 %v1768_v17  ;;  %v1806_v47 = vld [vmem:[%s2278_s14 + $0x68] ss:$16 sps:$4 sm:$0xff]   ;;  %v1809_v48 = vld [vmem:[%s2497_s3 + $0x64] ss:$16 sps:$4 sm:$0xff]   ;;  %v1812_v49 = vld [vmem:[%s2497_s3 + $0x6c] ss:$16 sps:$4 sm:$0xff]  }
  0x35   : > { %v1807_v50 = vld [vmem:[%s2497_s3 + $0x60] ss:$16 sps:$4 sm:$0xff]   ;;  %v1810_v51 = vld [vmem:[%s2497_s3 + $0x68] ss:$16 sps:$4 sm:$0xff]   ;;  %v1815_v52 = vld [vmem:[%s2497_s3 + $0x44] ss:$16 sps:$4 sm:$0xff]  }
  0x36   : > { %1627 = vmatpush3.bf16.msra.mxu0 %v1769_v18  ;;  %v1818_v53 = vld [vmem:[%s2497_s3 + $0x4c] ss:$16 sps:$4 sm:$0xff]   ;;  %v1813_v54 = vld [vmem:[%s2497_s3 + $0x40] ss:$16 sps:$4 sm:$0xff]   ;;  %v1816_v55 = vld [vmem:[%s2497_s3 + $0x48] ss:$16 sps:$4 sm:$0xff]  }
  0x37   : > { %1667 = vmatpush3.bf16.msra.mxu1 %v1770_v19  ;;  %1628 = vmatprep.subr.bf16.mxu0 %v1771_v20  ;;  %v1821_v56 = vld [vmem:[%s2497_s3 + $0x24] ss:$16 sps:$4 sm:$0xff]   ;;  %v1824_v57 = vld [vmem:[%s2497_s3 + $0x2c] ss:$16 sps:$4 sm:$0xff]   ;;  %v1819_v58 = vld [vmem:[%s2497_s3 + $0x20] ss:$16 sps:$4 sm:$0xff]  }
  0x38   : > { %1668 = vmatprep.subr.bf16.mxu1 %v1772_v21  ;;  %v1822_v59 = vld [vmem:[%s2497_s3 + $0x28] ss:$16 sps:$4 sm:$0xff]   ;;  %v1827_v60 = vld [vmem:[%s2497_s3 + $0x4] ss:$16 sps:$4 sm:$0xff]   ;;  %v1830_v61 = vld [vmem:[%s2497_s3 + $0xc] ss:$16 sps:$4 sm:$0xff]  }
  0x39   : > { %v1825_v62 = vld [vmem:[%s2497_s3] ss:$16 sps:$4 sm:$0xff]   ;;  %v1828_v63 = vld [vmem:[%s2497_s3 + $0x8] ss:$16 sps:$4 sm:$0xff]   ;;  %s2085_s14 = smov [#allocation5]  }
  0x3a   : > { %1629 = vmatpush3.bf16.msra.mxu0 %v1773_v22  ;;  %v2352_v3 = vld [vmem:[#allocation2] ss:$0 sm:$0xff]  ;;  %s2021_s12 = sshll.u32 %s2085_s14, 4  ;;  %s2022_s12 = int_to_ptr.vmem [resolvable:$false] %s2021_s12 }
  0x3b   : > { %1669 = vmatpush3.bf16.msra.mxu1 %v1774_v23  ;;  %1630 = vmatprep.subr.bf16.mxu0 %v1775_v24  ;;  %s2023_s15 = scalar_lea.vmem %s2022_s12, 4096  ;;  %p2024_p13 = scmp.lt.s32.totalorder %s2448_s8, %s2022_s12 }
  0x3c   : > { %1670 = vmatprep.subr.bf16.mxu1 %v1776_v25  ;;  %p2025_p0 = scmp.lt.s32.totalorder %s2023_s15, %s2017_s13 }
  0x3e   : > { %1631 = vmatpush3.bf16.msra.mxu0 %v1777_v26  ;;  %p2026_p1 = por %p2025_p0, %p2024_p13 }
  0x3f   : > { %1671 = vmatpush3.bf16.msra.mxu1 %v1778_v27  ;;  %1632 = vmatprep.subr.bf16.mxu0 %v1779_v28 }
  0x40   : > { %1672 = vmatprep.subr.bf16.mxu1 %v1780_v29  ;;  %p2027_p2 = pnand %p2026_p1, %p2020_p12 }
  0x42   : > { %1633 = vmatpush3.bf16.msra.mxu0 %v1781_v30 }
  0x43   : > { %1673 = vmatpush3.bf16.msra.mxu1 %v1782_v31  ;;  %923 = vmatprep.subr.bf16.mxu0 %v1809_v48 }
  0x44   : > { %996 = vmatprep.subr.bf16.mxu1 %v1812_v49 }
  0x45   : > { %635 = vmatmul.mubr.bf16.vlgmr.msra.gmra.mxu0 %v1783_v32 }
  0x46   : > { %700 = vmatmul.mubr.bf16.vlgmr.msra.gmra.mxu1 %v1786_v34  ;;  %642 = vmatprep.mubr.bf16.mxu0 %v1789_v36 }
  0x47   : > { %707 = vmatprep.mubr.bf16.mxu1 %v1791_v37  ;;  %924 = vmatpush1.bf16.msra.mxu0 %v1807_v50 }
  0x48   : > { %997 = vmatpush1.bf16.msra.mxu1 %v1810_v51  ;;  %925 = vmatprep.subr.bf16.mxu0 %v1815_v52 }
  0x49   : > { %998 = vmatprep.subr.bf16.mxu1 %v1818_v53 }
  0x4b   : > { %926 = vmatpush1.bf16.msra.mxu0 %v1813_v54 }
  0x4c   : > { %999 = vmatpush1.bf16.msra.mxu1 %v1816_v55  ;;  %927 = vmatprep.subr.bf16.mxu0 %v1821_v56 }
  0x4d   : > { %643 = vmatmul.mubr.bf16.gmra.mxu0 %v1793_v38  ;;  %1000 = vmatprep.subr.bf16.mxu1 %v1824_v57 }
  0x4e   : > { %708 = vmatmul.mubr.bf16.gmra.mxu1 %v1794_v39  ;;  %650 = vmatprep.mubr.bf16.mxu0 %v1795_v40 }
  0x4f   : > { %715 = vmatprep.mubr.bf16.mxu1 %v1797_v41  ;;  %928 = vmatpush1.bf16.msra.mxu0 %v1819_v58 }
  0x50   : > { %1001 = vmatpush1.bf16.msra.mxu1 %v1822_v59  ;;  %929 = vmatprep.subr.bf16.mxu0 %v1827_v60 }
  0x51   : > { %1002 = vmatprep.subr.bf16.mxu1 %v1830_v61 }
  0x53   : > { %930 = vmatpush1.bf16.msra.mxu0 %v1825_v62 }
  0x54   : > { %1003 = vmatpush1.bf16.msra.mxu1 %v1828_v63 }
  0x55   : > { %651 = vmatmul.mubr.bf16.gmra.mxu0 %v1799_v42 }
  0x56   : > { %716 = vmatmul.mubr.bf16.gmra.mxu1 %v1800_v43  ;;  %658 = vmatprep.mubr.bf16.mxu0 %v1801_v44 }
  0x57   : > { %723 = vmatprep.mubr.bf16.mxu1 %v1803_v45 }
  0x5d   : > { %659 = vmatmul.mubr.bf16.gmra.mxu0 %v1805_v46 }
  0x5e   : > { %724 = vmatmul.mubr.bf16.gmra.mxu1 %v1806_v47  ;;  %947 = vmatprep.mubr.bf16.mxu0 %v2084_v0 }
  0x5f   : > { %1020 = vmatprep.mubr.bf16.mxu1 %v2084_v0 }
 0x105   : > { %v1634_v1 = vpop.f32.mrf.mxu0 }
 0x106   : > { %v1674_v2 = vpop.f32.mrf.mxu1 }
 0x107   : > { %v1635_v4 = vpop.f32.mrf.mxu0 }
 0x108   : > { %v1636_v5 = vadd.f32 %v1635_v4, %v1634_v1  ;;  %v1675_v6 = vpop.f32.mrf.mxu1 }
 0x109   : > { %v1637_v7 = vpop.f32.mrf.mxu0  ;;  %v1676_v9 = vadd.f32 %v1675_v6, %v1674_v2 }
 0x10a   : > { %v637_v8 = vadd.f32 %v1636_v5, %v2352_v3  ;;  %v1677_v10 = vpop.f32.mrf.mxu1 }
 0x10b   : > { %v1638_v11 = vpop.f32.mrf.mxu0 }
 0x10c   : > { %v702_v12 = vadd.f32 %v1676_v9, %v637_v8  ;;  %v1639_v13 = vadd.f32 %v1638_v11, %v1637_v7  ;;  %v1678_v14 = vpop.f32.mrf.mxu1 }
 0x10d   : > { %v1640_v15 = vpop.f32.mrf.mxu0  ;;  %v1679_v18 = vadd.f32 %v1678_v14, %v1677_v10 }
 0x10e   : > { %v1513_v16 = vmul.f32 -1.442695, %v702_v12  ;;  %v640_v17 = vadd.f32 %v1639_v13, %v2352_v3  ;;  %v1680_v19 = vpop.f32.mrf.mxu1 }
 0x10f   : > { %v1641_v20 = vpop.f32.mrf.mxu0 }
 0x110   : > { %1831 = vpow2.f32 %v1513_v16  ;;  %v705_v21 = vadd.f32 %v1679_v18, %v640_v17  ;;  %v1642_v22 = vadd.f32 %v1641_v20, %v1640_v15  ;;  %v1681_v23 = vpop.f32.mrf.mxu1 }
 0x111   : > { %v1643_v24 = vpop.f32.mrf.mxu0  ;;  %v1682_v27 = vadd.f32 %v1681_v23, %v1680_v19 }
 0x112   : > { %v1514_v25 = vmul.f32 -1.442695, %v705_v21  ;;  %v645_v26 = vadd.f32 %v1642_v22, %v2352_v3  ;;  %v1683_v28 = vpop.f32.mrf.mxu1 }
 0x113   : > { %v1644_v29 = vpop.f32.mrf.mxu0 }
 0x114   : > { %1833 = vpow2.f32 %v1514_v25  ;;  %v710_v30 = vadd.f32 %v1682_v27, %v645_v26  ;;  %v1645_v31 = vadd.f32 %v1644_v29, %v1643_v24  ;;  %v1684_v32 = vpop.f32.mrf.mxu1 }
 0x115   : > { %v1646_v33 = vpop.f32.mrf.mxu0  ;;  %v1685_v36 = vadd.f32 %v1684_v32, %v1683_v28 }
 0x116   : > { %v1515_v34 = vmul.f32 -1.442695, %v710_v30  ;;  %v648_v35 = vadd.f32 %v1645_v31, %v2352_v3  ;;  %v1686_v37 = vpop.f32.mrf.mxu1 }
 0x117   : > { %v1647_v38 = vpop.f32.mrf.mxu0 }
 0x118   : > { %1835 = vpow2.f32 %v1515_v34  ;;  %v713_v39 = vadd.f32 %v1685_v36, %v648_v35  ;;  %v1648_v40 = vadd.f32 %v1647_v38, %v1646_v33  ;;  %v1687_v41 = vpop.f32.mrf.mxu1 }
 0x119   : > { %v1649_v42 = vpop.f32.mrf.mxu0  ;;  %v1688_v45 = vadd.f32 %v1687_v41, %v1686_v37 }
 0x11a   : > { %v1516_v43 = vmul.f32 -1.442695, %v713_v39  ;;  %v653_v44 = vadd.f32 %v1648_v40, %v2352_v3  ;;  %v1689_v46 = vpop.f32.mrf.mxu1  ;;  %v802_v39 = vlaneseq }
 0x11b   : > { %v1650_v47 = vpop.f32.mrf.mxu0 }
 0x11c   : > { %1837 = vpow2.f32 %v1516_v43  ;;  %v718_v48 = vadd.f32 %v1688_v45, %v653_v44  ;;  %v1651_v49 = vadd.f32 %v1650_v47, %v1649_v42  ;;  %v1690_v50 = vpop.f32.mrf.mxu1  ;;  %v803_v40 = vshrl.u32 %v802_v39, 7  ;;  %v800_v43 = vld [vmem:[%s2498_s4] sm:$0xf] }
 0x11d   : > { %v1832_v51 = vpop.eup %1831  ;;  %v1652_v52 = vpop.f32.mrf.mxu0  ;;  %v1691_v55 = vadd.f32 %v1690_v50, %v1689_v46 }
 0x11e   : > { %v1517_v53 = vmul.f32 -1.442695, %v718_v48  ;;  %v656_v54 = vadd.f32 %v1651_v49, %v2352_v3  ;;  %v1692_v56 = vpop.f32.mrf.mxu1  ;;  %v756_v57 = vadd.f32 1.0, %v1832_v51  ;;  %v804_v41 = vsub.s32 0, %v803_v40 }
 0x11f   : > { %v1653_v58 = vpop.f32.mrf.mxu0  ;;  %v812_v42 = vsub.s32 2, %v803_v40  ;;  %v808_v44 = vsub.s32 1, %v803_v40  ;;  %v816_v45 = vsub.s32 3, %v803_v40 }
 0x120   : > { %v721_v59 = vadd.f32 %v1691_v55, %v656_v54  ;;  %v1654_v60 = vadd.f32 %v1653_v58, %v1652_v52  ;;  %v1693_v61 = vpop.f32.mrf.mxu1  ;;  %1839 = vpow2.f32 %v1517_v53  ;;  %v2379_v46 = vrot.slane %v800_v43, %v804_v41 }
 0x121   : > { %v1834_v62 = vpop.eup %1833  ;;  %v1655_v63 = vpop.f32.mrf.mxu0  ;;  %v1694_v5 = vadd.f32 %v1693_v61, %v1692_v56  ;;  %1841 = vrcp.f32 %v756_v57  ;;  %v2383_v47 = vrot.slane %v800_v43, %v808_v44  ;;  %v2385_v48 = vrot.slane %v800_v43, %v816_v45 }
 0x122   : > { %v757_v1 = vadd.f32 1.0, %v1834_v62  ;;  %v1518_v2 = vmul.f32 -1.442695, %v721_v59  ;;  %v661_v4 = vadd.f32 %v1654_v60, %v2352_v3  ;;  %v1695_v6 = vpop.f32.mrf.mxu1 }
 0x123   : > { %v1656_v7 = vpop.f32.mrf.mxu0 }
 0x124   : > { %1843 = vrcp.f32 %v757_v1  ;;  %v726_v8 = vadd.f32 %v1694_v5, %v661_v4  ;;  %v1657_v9 = vadd.f32 %v1656_v7, %v1655_v63  ;;  %v1696_v10 = vpop.f32.mrf.mxu1 }
 0x125   : > { %v1836_v11 = vpop.eup %1835  ;;  %1845 = vpow2.f32 %v1518_v2  ;;  %v1697_v14 = vadd.f32 %v1696_v10, %v1695_v6 }
 0x126   : > { %v1519_v12 = vmul.f32 -1.442695, %v726_v8  ;;  %v664_v13 = vadd.f32 %v1657_v9, %v2352_v3  ;;  %v758_v15 = vadd.f32 1.0, %v1836_v11 }
 0x128   : > { %v729_v16 = vadd.f32 %v1697_v14, %v664_v13  ;;  %1847 = vpow2.f32 %v1519_v12 }
 0x129   : > { %v1838_v17 = vpop.eup %1837  ;;  %1849 = vrcp.f32 %v758_v15 }
 0x12a   : > { %v759_v18 = vadd.f32 1.0, %v1838_v17  ;;  %v1520_v19 = vmul.f32 -1.442695, %v729_v16 }
 0x12c   : > { %1851 = vrcp.f32 %v759_v18 }
 0x12d   : > { %1853 = vpow2.f32 %v1520_v19  ;;  %v1840_v20 = vpop.eup %1839 }
 0x12e   : > { %v1842_v21 = vpop.eup %1841  ;;  %v760_v22 = vadd.f32 1.0, %v1840_v20 }
 0x130   : > { %1855 = vrcp.f32 %v760_v22 }
 0x131   : > { %v1844_v23 = vpop.eup %1843 }
 0x132   : > { %v1846_v24 = vpop.eup %1845  ;;  %v780_v25 = vpack.c.bf16 %v1844_v23, %v1842_v21 }
 0x133   : > { %v761_v26 = vadd.f32 1.0, %v1846_v24 }
 0x134   : > { %1537 = vmatmul.mubr.msk.bf16.vlgmr.msra.gmra.mxu0 %vm902_vm0, %v780_v25  ;;  %1541 = vmatmul.mubr.msk.bf16.vlgmr.msra.gmra.mxu1 %vm902_vm0, %v780_v25 }
 0x135   : > { %1857 = vrcp.f32 %v761_v26  ;;  %957 = vmatprep.mubr.bf16.mxu0 %v2084_v0  ;;  %1030 = vmatprep.mubr.bf16.mxu1 %v2084_v0  ;;  %v1848_v3 = vpop.eup %1847 }
 0x136   : > { %v1850_v27 = vpop.eup %1849  ;;  %v762_v28 = vadd.f32 1.0, %v1848_v3 }
 0x138   : > { %1859 = vrcp.f32 %v762_v28 }
 0x139   : > { %v1852_v29 = vpop.eup %1851 }
 0x13a   : > { %v1854_v30 = vpop.eup %1853  ;;  %v781_v31 = vpack.c.bf16 %v1852_v29, %v1850_v27 }
 0x13b   : > { %v763_v32 = vadd.f32 1.0, %v1854_v30 }
 0x13c   : > { %1538 = vmatmul.mubr.msk.bf16.gmra.mxu0 %vm902_vm0, %v781_v31  ;;  %1542 = vmatmul.mubr.msk.bf16.gmra.mxu1 %vm902_vm0, %v781_v31 }
 0x13d   : > { %1861 = vrcp.f32 %v763_v32  ;;  %967 = vmatprep.mubr.bf16.mxu0 %v2084_v0  ;;  %1040 = vmatprep.mubr.bf16.mxu1 %v2084_v0  ;;  %v1856_v33 = vpop.eup %1855 }
 0x142   : > { %v1858_v34 = vpop.eup %1857 }
 0x143   : > { %v782_v35 = vpack.c.bf16 %v1858_v34, %v1856_v33 }
 0x145   : > { %1539 = vmatmul.mubr.msk.bf16.gmra.mxu0 %vm902_vm0, %v782_v35  ;;  %1543 = vmatmul.mubr.msk.bf16.gmra.mxu1 %vm902_vm0, %v782_v35  ;;  %v1860_v36 = vpop.eup %1859 }
 0x146   : > { %977 = vmatprep.mubr.bf16.mxu0 %v2084_v0  ;;  %1050 = vmatprep.mubr.bf16.mxu1 %v2084_v0  ;;  %v2381_v0 = vrot.slane %v800_v43, %v812_v42 }
 0x14a   : > { %v1862_v37 = vpop.eup %1861 }
 0x14b   : > { %v783_v38 = vpack.c.bf16 %v1862_v37, %v1860_v36 }
 0x14d   : > { %1540 = vmatmul.mubr.msk.bf16.gmra.mxu0 %vm902_vm0, %v783_v38  ;;  %1544 = vmatmul.mubr.msk.bf16.gmra.mxu1 %vm902_vm0, %v783_v38 }
 0x1f4   : > { %v949_v49 = vpop.f32.mrf.mxu0  ;;  %v1022_v50 = vpop.f32.mrf.mxu1 }
 0x1f5   : > { %v950_v51 = vadd.f32 %v949_v49, %v2379_v46  ;;  %v1023_v52 = vadd.f32 %v1022_v50, %v2381_v0 }
 0x1f6   : > { %v951_v53 = vpop.f32.mrf.mxu0  ;;  %v1024_v54 = vpop.f32.mrf.mxu1 }
 0x1f7   : > { %v1545_v55 = vmul.f32 -1.442695, %v950_v51  ;;  %v1547_v56 = vmul.f32 -1.442695, %v1023_v52  ;;  %v952_v57 = vadd.f32 %v951_v53, %v2383_v47  ;;  %v1025_v58 = vadd.f32 %v1024_v54, %v2385_v48 }
 0x1f8   : > { %v953_v59 = vpop.f32.mrf.mxu0  ;;  %v1026_v60 = vpop.f32.mrf.mxu1 }
 0x1f9   : > { %1863 = vpow2.f32 %v1545_v55  ;;  %v1546_v61 = vmul.f32 -1.442695, %v952_v57  ;;  %v1548_v62 = vmul.f32 -1.442695, %v1025_v58  ;;  %v954_v63 = vadd.f32 %v953_v59, %v2379_v46 }
 0x1fa   : > { %1865 = vpow2.f32 %v1547_v56  ;;  %v1027_v1 = vadd.f32 %v1026_v60, %v2381_v0  ;;  %v955_v2 = vpop.f32.mrf.mxu0  ;;  %v1028_v4 = vpop.f32.mrf.mxu1 }
 0x1fb   : > { %1867 = vpow2.f32 %v1546_v61  ;;  %v1549_v5 = vmul.f32 -1.442695, %v954_v63  ;;  %v956_v6 = vadd.f32 %v955_v2, %v2383_v47  ;;  %v1029_v7 = vadd.f32 %v1028_v4, %v2385_v48 }
 0x1fc   : > { %1869 = vpow2.f32 %v1548_v62  ;;  %v1551_v8 = vmul.f32 -1.442695, %v1027_v1  ;;  %v959_v9 = vpop.f32.mrf.mxu0  ;;  %v1032_v10 = vpop.f32.mrf.mxu1 }
 0x1fd   : > { %1871 = vpow2.f32 %v1549_v5  ;;  %v1550_v11 = vmul.f32 -1.442695, %v956_v6  ;;  %v1552_v12 = vmul.f32 -1.442695, %v1029_v7  ;;  %v960_v13 = vadd.f32 %v959_v9, %v2379_v46 }
 0x1fe   : > { %1873 = vpow2.f32 %v1551_v8  ;;  %v1033_v14 = vadd.f32 %v1032_v10, %v2381_v0  ;;  %v961_v15 = vpop.f32.mrf.mxu0  ;;  %v1034_v16 = vpop.f32.mrf.mxu1 }
 0x1ff   : > { %1875 = vpow2.f32 %v1550_v11  ;;  %v1553_v17 = vmul.f32 -1.442695, %v960_v13  ;;  %v962_v18 = vadd.f32 %v961_v15, %v2383_v47  ;;  %v1035_v19 = vadd.f32 %v1034_v16, %v2385_v48 }
 0x200   : > { %1877 = vpow2.f32 %v1552_v12  ;;  %v1555_v20 = vmul.f32 -1.442695, %v1033_v14  ;;  %v963_v21 = vpop.f32.mrf.mxu0  ;;  %v1036_v22 = vpop.f32.mrf.mxu1 }
 0x201   : > { %1879 = vpow2.f32 %v1553_v17  ;;  %v1554_v23 = vmul.f32 -1.442695, %v962_v18  ;;  %v1556_v24 = vmul.f32 -1.442695, %v1035_v19  ;;  %v964_v25 = vadd.f32 %v963_v21, %v2379_v46 }
 0x202   : > { %1881 = vpow2.f32 %v1555_v20  ;;  %v1037_v26 = vadd.f32 %v1036_v22, %v2381_v0  ;;  %v965_v3 = vpop.f32.mrf.mxu0  ;;  %v1038_v27 = vpop.f32.mrf.mxu1 }
 0x203   : > { %1883 = vpow2.f32 %v1554_v23  ;;  %v1557_v28 = vmul.f32 -1.442695, %v964_v25  ;;  %v966_v29 = vadd.f32 %v965_v3, %v2383_v47  ;;  %v1039_v30 = vadd.f32 %v1038_v27, %v2385_v48 }
 0x204   : > { %1885 = vpow2.f32 %v1556_v24  ;;  %v1559_v31 = vmul.f32 -1.442695, %v1037_v26 }
 0x205   : > { %1887 = vpow2.f32 %v1557_v28  ;;  %v1558_v32 = vmul.f32 -1.442695, %v966_v29  ;;  %v1560_v33 = vmul.f32 -1.442695, %v1039_v30  ;;  %v969_v34 = vpop.f32.mrf.mxu0  ;;  %v1042_v35 = vpop.f32.mrf.mxu1 }
 0x206   : > { %v1864_v36 = vpop.eup %1863  ;;  %1889 = vpow2.f32 %v1559_v31  ;;  %v970_v7 = vadd.f32 %v969_v34, %v2379_v46  ;;  %v1043_v11 = vadd.f32 %v1042_v35, %v2381_v0 }
 0x207   : > { %v1866_v37 = vpop.eup %1865  ;;  %v1157_v38 = vadd.f32 1.0, %v1864_v36  ;;  %1891 = vpow2.f32 %v1558_v32  ;;  %v971_v39 = vpop.f32.mrf.mxu0 }
 0x208   : > { %v1044_v40 = vpop.f32.mrf.mxu1  ;;  %v1868_v41 = vpop.eup %1867  ;;  %v1159_v42 = vadd.f32 1.0, %v1866_v37  ;;  %1893 = vpow2.f32 %v1560_v33  ;;  %v972_v14 = vadd.f32 %v971_v39, %v2383_v47  ;;  %v1561_v21 = vmul.f32 -1.442695, %v970_v7 }
 0x209   : > { %v1870_v43 = vpop.eup %1869  ;;  %1895 = vrcp.f32 %v1157_v38  ;;  %v1158_v44 = vadd.f32 1.0, %v1868_v41  ;;  %v973_v45 = vpop.f32.mrf.mxu0  ;;  %v1045_v17 = vadd.f32 %v1044_v40, %v2385_v48  ;;  %v1563_v26 = vmul.f32 -1.442695, %v1043_v11 }
 0x20a   : > { %v1046_v49 = vpop.f32.mrf.mxu1  ;;  %v1872_v50 = vpop.eup %1871  ;;  %1897 = vrcp.f32 %v1159_v42  ;;  %v1160_v51 = vadd.f32 1.0, %v1870_v43  ;;  %v974_v22 = vadd.f32 %v973_v45, %v2379_v46  ;;  %v1562_v28 = vmul.f32 -1.442695, %v972_v14 }
 0x20b   : > { %v1874_v52 = vpop.eup %1873  ;;  %1899 = vrcp.f32 %v1158_v44  ;;  %v1161_v53 = vadd.f32 1.0, %v1872_v50  ;;  %v975_v56 = vpop.f32.mrf.mxu0  ;;  %v1047_v3 = vadd.f32 %v1046_v49, %v2381_v0  ;;  %v1564_v31 = vmul.f32 -1.442695, %v1045_v17 }
 0x20c   : > { %v1876_v54 = vpop.eup %1875  ;;  %1901 = vrcp.f32 %v1160_v51  ;;  %v1163_v55 = vadd.f32 1.0, %v1874_v52  ;;  %v1048_v59 = vpop.f32.mrf.mxu1  ;;  %v976_v29 = vadd.f32 %v975_v56, %v2383_v47  ;;  %v1565_v36 = vmul.f32 -1.442695, %v974_v22 }
 0x20d   : > { %v1878_v57 = vpop.eup %1877  ;;  %1903 = vrcp.f32 %v1161_v53  ;;  %v1162_v58 = vadd.f32 1.0, %v1876_v54  ;;  %v979_v4 = vpop.f32.mrf.mxu0  ;;  %v1049_v32 = vadd.f32 %v1048_v59, %v2385_v48  ;;  %v1567_v41 = vmul.f32 -1.442695, %v1047_v3 }
 0x20e   : > { %v1880_v60 = vpop.eup %1879  ;;  %1905 = vrcp.f32 %v1163_v55  ;;  %v1164_v61 = vadd.f32 1.0, %v1878_v57  ;;  %v1052_v8 = vpop.f32.mrf.mxu1  ;;  %v980_v37 = vadd.f32 %v979_v4, %v2379_v46  ;;  %v1566_v44 = vmul.f32 -1.442695, %v976_v29 }
 0x20f   : > { %v1882_v62 = vpop.eup %1881  ;;  %1907 = vrcp.f32 %v1162_v58  ;;  %v1165_v63 = vadd.f32 1.0, %v1880_v60  ;;  %v981_v18 = vpop.f32.mrf.mxu0  ;;  %v1053_v42 = vadd.f32 %v1052_v8, %v2381_v0  ;;  %v1568_v50 = vmul.f32 -1.442695, %v1049_v32 }
 0x210   : > { %v1884_v1 = vpop.eup %1883  ;;  %1909 = vrcp.f32 %v1164_v61  ;;  %v1167_v2 = vadd.f32 1.0, %v1882_v62  ;;  %v1054_v23 = vpop.f32.mrf.mxu1  ;;  %v982_v45 = vadd.f32 %v981_v18, %v2383_v47  ;;  %v1569_v55 = vmul.f32 -1.442695, %v980_v37 }
 0x211   : > { %v1886_v5 = vpop.eup %1885  ;;  %1911 = vrcp.f32 %v1165_v63  ;;  %v1166_v6 = vadd.f32 1.0, %v1884_v1  ;;  %v983_v33 = vpop.f32.mrf.mxu0  ;;  %v1055_v51 = vadd.f32 %v1054_v23, %v2385_v48  ;;  %v1571_v60 = vmul.f32 -1.442695, %v1053_v42 }
 0x212   : > { %v1888_v9 = vpop.eup %1887  ;;  %1913 = vrcp.f32 %v1167_v2  ;;  %v1168_v10 = vadd.f32 1.0, %v1886_v5  ;;  %v1056_v38 = vpop.f32.mrf.mxu1  ;;  %v984_v56 = vadd.f32 %v983_v33, %v2379_v46  ;;  %v1570_v63 = vmul.f32 -1.442695, %v982_v45 }
 0x213   : > { %v1890_v12 = vpop.eup %1889  ;;  %1915 = vrcp.f32 %v1166_v6  ;;  %v1169_v13 = vadd.f32 1.0, %v1888_v9  ;;  %v985_v52 = vpop.f32.mrf.mxu0  ;;  %v1057_v61 = vadd.f32 %v1056_v38, %v2381_v0  ;;  %v1572_v4 = vmul.f32 -1.442695, %v1055_v51 }
 0x214   : > { %v1892_v15 = vpop.eup %1891  ;;  %1917 = vrcp.f32 %v1168_v10  ;;  %v1171_v16 = vadd.f32 1.0, %v1890_v12  ;;  %v1058_v57 = vpop.f32.mrf.mxu1  ;;  %v986_v1 = vadd.f32 %v985_v52, %v2383_v47  ;;  %v1573_v7 = vmul.f32 -1.442695, %v984_v56 }
 0x215   : > { %v1894_v19 = vpop.eup %1893  ;;  %1919 = vrcp.f32 %v1169_v13  ;;  %v1170_v20 = vadd.f32 1.0, %v1892_v15  ;;  %v1059_v46 = vadd.f32 %v1058_v57, %v2385_v48  ;;  %v1575_v9 = vmul.f32 -1.442695, %v1057_v61 }
 0x216   : > { %v1896_v24 = vpop.eup %1895  ;;  %1921 = vrcp.f32 %v1171_v16  ;;  %v1172_v25 = vadd.f32 1.0, %v1894_v19  ;;  %v1574_v47 = vmul.f32 -1.442695, %v986_v1 }
 0x217   : > { %v1898_v27 = vpop.eup %1897  ;;  %1923 = vrcp.f32 %v1170_v20  ;;  %v1576_v12 = vmul.f32 -1.442695, %v1059_v46 }
 0x218   : > { %v1900_v30 = vpop.eup %1899  ;;  %1925 = vrcp.f32 %v1172_v25 }
 0x219   : > { %v1902_v34 = vpop.eup %1901  ;;  %v1600_v35 = vpack.c.bf16 %v1900_v30, %v1896_v24  ;;  %1927 = vpow2.f32 %v1561_v21 }
 0x21a   : > { %v1904_v39 = vpop.eup %1903  ;;  %v1601_v40 = vpack.c.bf16 %v1902_v34, %v1898_v27  ;;  %1929 = vpow2.f32 %v1563_v26 }
 0x21b   : > { %v1906_v43 = vpop.eup %1905  ;;  %1349 = vst [vmem:[%s2419_s6] sm:$0xff] %v1600_v35  ;;  %1931 = vpow2.f32 %v1562_v28 }
 0x21c   : > { %v1908_v49 = vpop.eup %1907  ;;  %1350 = vst [vmem:[%s2419_s6 + $0x8] sm:$0xff] %v1601_v40  ;;  %1933 = vpow2.f32 %v1564_v31 }
 0x21d   : > { %v1910_v53 = vpop.eup %1909  ;;  %v1602_v54 = vpack.c.bf16 %v1908_v49, %v1904_v39  ;;  %1935 = vpow2.f32 %v1565_v36 }
 0x21e   : > { %v1912_v58 = vpop.eup %1911  ;;  %v1603_v59 = vpack.c.bf16 %v1910_v53, %v1906_v43  ;;  %1937 = vpow2.f32 %v1567_v41 }
 0x21f   : > { %v1914_v62 = vpop.eup %1913  ;;  %1351 = vst [vmem:[%s2419_s6 + $0x10] sm:$0xff] %v1602_v54  ;;  %1939 = vpow2.f32 %v1566_v44 }
 0x220   : > { %v1916_v2 = vpop.eup %1915  ;;  %1352 = vst [vmem:[%s2419_s6 + $0x18] sm:$0xff] %v1603_v59  ;;  %1941 = vpow2.f32 %v1568_v50 }
 0x221   : > { %v1918_v5 = vpop.eup %1917  ;;  %v1604_v6 = vpack.c.bf16 %v1916_v2, %v1912_v58  ;;  %1943 = vpow2.f32 %v1569_v55 }
 0x222   : > { %v1920_v8 = vpop.eup %1919  ;;  %v1605_v0 = vpack.c.bf16 %v1918_v5, %v1914_v62  ;;  %1945 = vpow2.f32 %v1571_v60 }
 0x223   : > { %v1922_v10 = vpop.eup %1921  ;;  %1353 = vst [vmem:[%s2419_s6 + $0x20] sm:$0xff] %v1604_v6  ;;  %1947 = vpow2.f32 %v1570_v63 }
 0x224   : > { %v1924_v11 = vpop.eup %1923  ;;  %1354 = vst [vmem:[%s2419_s6 + $0x28] sm:$0xff] %v1605_v0  ;;  %1949 = vpow2.f32 %v1572_v4 }
 0x225   : > { %v1926_v13 = vpop.eup %1925  ;;  %v1606_v48 = vpack.c.bf16 %v1924_v11, %v1920_v8  ;;  %1951 = vpow2.f32 %v1573_v7 }
 0x226   : > { %v1928_v14 = vpop.eup %1927  ;;  %v1607_v15 = vpack.c.bf16 %v1926_v13, %v1922_v10  ;;  %1953 = vpow2.f32 %v1575_v9 }
 0x227   : > { %v1930_v16 = vpop.eup %1929  ;;  %1355 = vst [vmem:[%s2419_s6 + $0x30] sm:$0xff] %v1606_v48  ;;  %v1173_v17 = vadd.f32 1.0, %v1928_v14  ;;  %1955 = vpow2.f32 %v1574_v47 }
 0x228   : > { %v1932_v18 = vpop.eup %1931  ;;  %1356 = vst [vmem:[%s2419_s6 + $0x38] sm:$0xff] %v1607_v15  ;;  %v1175_v19 = vadd.f32 1.0, %v1930_v16  ;;  %1957 = vpow2.f32 %v1576_v12 }
 0x229   : > { %v1934_v20 = vpop.eup %1933  ;;  %1959 = vrcp.f32 %v1173_v17  ;;  %v1174_v21 = vadd.f32 1.0, %v1932_v18 }
 0x22a   : > { %v1936_v22 = vpop.eup %1935  ;;  %1961 = vrcp.f32 %v1175_v19  ;;  %v1176_v23 = vadd.f32 1.0, %v1934_v20 }
 0x22b   : > { %v1938_v24 = vpop.eup %1937  ;;  %1963 = vrcp.f32 %v1174_v21  ;;  %v1177_v25 = vadd.f32 1.0, %v1936_v22 }
 0x22c   : > { %v1940_v26 = vpop.eup %1939  ;;  %1965 = vrcp.f32 %v1176_v23  ;;  %v1179_v3 = vadd.f32 1.0, %v1938_v24 }
 0x22d   : > { %v1942_v27 = vpop.eup %1941  ;;  %1967 = vrcp.f32 %v1177_v25  ;;  %v1178_v28 = vadd.f32 1.0, %v1940_v26 }
 0x22e   : > { %v1944_v29 = vpop.eup %1943  ;;  %1969 = vrcp.f32 %v1179_v3  ;;  %v1180_v30 = vadd.f32 1.0, %v1942_v27 }
 0x22f   : > { %v1946_v31 = vpop.eup %1945  ;;  %1971 = vrcp.f32 %v1178_v28  ;;  %v1181_v32 = vadd.f32 1.0, %v1944_v29 }
 0x230   : > { %v1948_v33 = vpop.eup %1947  ;;  %1973 = vrcp.f32 %v1180_v30  ;;  %v1183_v34 = vadd.f32 1.0, %v1946_v31 }
 0x231   : > { %v1950_v35 = vpop.eup %1949  ;;  %1975 = vrcp.f32 %v1181_v32  ;;  %v1182_v36 = vadd.f32 1.0, %v1948_v33 }
 0x232   : > { %v1952_v37 = vpop.eup %1951  ;;  %1977 = vrcp.f32 %v1183_v34  ;;  %v1184_v38 = vadd.f32 1.0, %v1950_v35 }
 0x233   : > { %v1954_v39 = vpop.eup %1953  ;;  %1979 = vrcp.f32 %v1182_v36  ;;  %v1185_v40 = vadd.f32 1.0, %v1952_v37 }
 0x234   : > { %v1956_v41 = vpop.eup %1955  ;;  %1981 = vrcp.f32 %v1184_v38  ;;  %v1187_v42 = vadd.f32 1.0, %v1954_v39 }
 0x235   : > { %v1958_v43 = vpop.eup %1957  ;;  %1983 = vrcp.f32 %v1185_v40  ;;  %v1186_v44 = vadd.f32 1.0, %v1956_v41 }
 0x236   : > { %v1960_v45 = vpop.eup %1959  ;;  %1985 = vrcp.f32 %v1187_v42  ;;  %v1188_v49 = vadd.f32 1.0, %v1958_v43 }
 0x237   : > { %v1962_v50 = vpop.eup %1961  ;;  %1987 = vrcp.f32 %v1186_v44 }
 0x238   : > { %v1964_v51 = vpop.eup %1963  ;;  %1989 = vrcp.f32 %v1188_v49 }
 0x239   : > { %v1966_v52 = vpop.eup %1965  ;;  %v1608_v53 = vpack.c.bf16 %v1964_v51, %v1960_v45 }
 0x23a   : > { %v1968_v54 = vpop.eup %1967  ;;  %v1609_v55 = vpack.c.bf16 %v1966_v52, %v1962_v50 }
 0x23b   : > { %v1970_v56 = vpop.eup %1969  ;;  %1357 = vst [vmem:[%s2419_s6 + $0x40] sm:$0xff] %v1608_v53 }
 0x23c   : > { %v1972_v57 = vpop.eup %1971  ;;  %1358 = vst [vmem:[%s2419_s6 + $0x48] sm:$0xff] %v1609_v55 }
 0x23d   : > { %v1974_v58 = vpop.eup %1973  ;;  %v1610_v59 = vpack.c.bf16 %v1972_v57, %v1968_v54 }
 0x23e   : > { %v1976_v60 = vpop.eup %1975  ;;  %v1611_v61 = vpack.c.bf16 %v1974_v58, %v1970_v56 }
 0x23f   : > { %v1978_v62 = vpop.eup %1977  ;;  %1359 = vst [vmem:[%s2419_s6 + $0x50] sm:$0xff] %v1610_v59 }
 0x240   : > { %v1980_v63 = vpop.eup %1979  ;;  %1360 = vst [vmem:[%s2419_s6 + $0x58] sm:$0xff] %v1611_v61 }
 0x241   : > { %v1982_v1 = vpop.eup %1981  ;;  %v1612_v2 = vpack.c.bf16 %v1980_v63, %v1976_v60 }
 0x242   : > { %v1984_v4 = vpop.eup %1983  ;;  %v1613_v46 = vpack.c.bf16 %v1982_v1, %v1978_v62 }
 0x243   : > { %v1986_v5 = vpop.eup %1985  ;;  %1361 = vst [vmem:[%s2419_s6 + $0x60] sm:$0xff] %v1612_v2 }
 0x244   : > { %v1988_v6 = vpop.eup %1987  ;;  %1362 = vst [vmem:[%s2419_s6 + $0x68] sm:$0xff] %v1613_v46 }
 0x245   : > { %v1990_v7 = vpop.eup %1989  ;;  %v1614_v8 = vpack.c.bf16 %v1988_v6, %v1984_v4 }
 0x246   : > { %v1615_v0 = vpack.c.bf16 %v1990_v7, %v1986_v5 }
 0x247   : > { %1363 = vst [vmem:[%s2419_s6 + $0x70] sm:$0xff] %v1614_v8 }
 0x248   : > { %1364 = vst [vmem:[%s2419_s6 + $0x78] sm:$0xff] %v1615_v0 }
 0x249   : > { %2030 = shalt.err (!%p2027_p2)
}
 0x24a   : > { %s2031_s16 = scalar_lea.hbm %s2446_s11, 2048  ;;  %s2035_s25 = scalar_lea.hbm %s2499_s5, 4096 }
 0x24b   : > { %p2032_p3 = scmp.ne.s32.totalorder %s2446_s11, %s2031_s16  ;;  %p2036_p8 = scmp.lt.s32.totalorder %s2446_s11, %s2499_s5 }
 0x24c   : > { %p2037_p9 = scmp.lt.s32.totalorder %s2035_s25, %s2031_s16 }
 0x24d   : > { %p2033_p4 = pnand %p2032_p3, %p2156_p5 }
 0x24e   : > { %p2038_p10 = por %p2037_p9, %p2036_p8 }
 0x24f   : > { %p2034_p7 = pneg %p2033_p4 }
 0x251   : > { %p2039_p11 = pnand %p2038_p10, %p2034_p7 }
 0x253   : > { %2042 = shalt.err (!%p2039_p11)
}
 0x254   : > { %s2086_s6 = smov 256   ;;  %s2087_s7 = smov 16  }
 0x255   : > { %1702 = dma.vmem_to_hbm [thread:$0]  (%p2156_p5), %s2448_s8, 2048, %s2446_s11, %s2454_s22, %s2086_s6, %s2086_s6, %s2087_s7  }
 0x256 PF: > { %p1714_p12 = scmp.ge.s32.totalorder %s2081_s21, 2  ;;  %s1395_s9 = sand.u32 1, %s2069_s18  }
 0x257   : > { %s1396_s10 = scalar_lea.sflag [#allocation4], %s1395_s9 }
 0x258   : > { %p1709_p13 = pnand %p1714_p12, %p2160_p6 }
 0x25a   : > { %p1710_p0 = pneg %p1709_p13 }
 0x25c   : > { %2064 = dma.done.wait (%p1710_p0), %s1396_s10, 2048  }
 0x25d   : > { %2066 = vsyncadd (%p1710_p0), %s1396_s10, 4294965248  ;;  %p16_p1 = scmp.ge.s32.totalorder %s2143_s24, 4   ;;  %s2503_s18 = smov %s2073_s19 }
 0x25e   : > { %s2504_s19 = smov %s2077_s20  ;;  %s2505_s20 = smov %s2154_s27 }
 0x25f   : > { %s2506_s21 = smov %s2143_s24  ;;  %18 = sbr.rel (!%p16_p1) target bundleno = 4 (0x4), region = 80 }
 0x264   :  { %1401 = vsyncpa [#allocation3], 1 }
 0x265   :  { %1403 = vsyncpa [#allocation3 + $0x1], 1 }
 0x266   :  { %1404 = vsyncpa [#allocation4], 1 }
 0x267   :  { %1406 = vsyncpa [#allocation4 + $0x1], 1 }

</bundles_post_ra>
